<compile_context>
chip_gen: v5e
topology: v5e:2x2
jax: 0.10.0
libtpu: 0.0.40
codegen_flags: <defaults>
</compile_context>

<pallas_src>
import functools

import jax
import jax.numpy as jnp
from jax.experimental import pallas as pl
from jax.experimental.pallas import tpu as pltpu


def _round_up(v, m):
    return ((v + m - 1) // m) * m


def model_kernel(x_ref, wcat_ref, o_ref, *, B, N, Ep, Hp):
    # x_ref:    (B*N, F)        compute dtype (f32 or bf16)
    # wcat_ref: (F, 2*Ep + Hp)  compute dtype, layout [W1p | W2p | Woutp]
    # o_ref:    (B, N, Hp)      f32, lane-dense (Hp % 128 == 0)
    x2d = x_ref[...]
    cdt = x2d.dtype

    # --- fused X projections: one wide MXU pass, f32 accumulation ---
    proj = jnp.dot(x2d, wcat_ref[...], preferred_element_type=jnp.float32)

    # lane-tile-aligned slices (Ep, Hp are multiples of 128), split batch back out
    e1 = proj[:, :Ep].reshape(B, N, Ep)
    e2 = proj[:, Ep:2 * Ep].reshape(B, N, Ep)
    h = proj[:, 2 * Ep:].reshape(B, N, Hp)

    # --- GraphLearner: relu + row-softmax adjacency ---
    # contract on the shared E axis directly (no explicit transpose of e2)
    scores = jnp.einsum("bne,bme->bnm", e1.astype(cdt), e2.astype(cdt),
                        preferred_element_type=jnp.float32)            # (B, N, N)
    scores = jnp.maximum(scores, 0.0)
    scores = scores - jnp.max(scores, axis=-1, keepdims=True)           # stable softmax
    p = jnp.exp(scores)
    denom = jnp.sum(p, axis=-1, keepdims=True)
    supports = p * pl.reciprocal(denom, approx=True)                    # EUP vrcp

    # --- Predictor: graph convolution, lane-dense output ---
    out = jnp.einsum("bnm,bmh->bnh", supports.astype(cdt), h.astype(cdt),
                     preferred_element_type=jnp.float32)                # (B, N, Hp)
    o_ref[...] = out.astype(o_ref.dtype)


def model_forward(x, w1, w2, wout, *, compute_dtype=jnp.float32):
    B, N, F = x.shape
    E = w1.shape[1]
    H = wout.shape[1]
    Ep = _round_up(E, 128)
    Hp = _round_up(H, 128)

    # Zero-pad each weight's output dim to a 128-lane multiple and concatenate so
    # the kernel runs a single projection matmul and slices on aligned boundaries.
    w1p = jnp.zeros((F, Ep), w1.dtype).at[:, :E].set(w1)
    w2p = jnp.zeros((F, Ep), w2.dtype).at[:, :E].set(w2)
    wop = jnp.zeros((F, Hp), wout.dtype).at[:, :H].set(wout)
    wcat = jnp.concatenate([w1p, w2p, wop], axis=1).astype(compute_dtype)

    x2d = x.reshape(B * N, F).astype(compute_dtype)   # tall M for the MXU

    kernel = functools.partial(model_kernel, B=B, N=N, Ep=Ep, Hp=Hp)
    out_padded = pl.pallas_call(
        kernel,
        out_shape=jax.ShapeDtypeStruct((B, N, Hp), jnp.float32),
        in_specs=[
            pl.BlockSpec(memory_space=pltpu.MemorySpace.VMEM),
            pl.BlockSpec(memory_space=pltpu.MemorySpace.VMEM),
        ],
        out_specs=pl.BlockSpec(memory_space=pltpu.MemorySpace.VMEM),
    )(x2d, wcat)
    return out_padded[:, :, :H]


def model_reference(x, w1, w2, wout):
    e1 = x @ w1
    e2 = x @ w2
    scores = jax.nn.relu(jnp.einsum("bne,bme->bnm", e1, e2))
    supports = jax.nn.softmax(scores, axis=-1)
    return jnp.einsum("bnm,bmh->bnh", supports, x @ wout)


if __name__ == "__main__":
    B, N, F, E, H = 2, 8, 32, 16, 32

    key = jax.random.PRNGKey(0)
    kx, k1, k2, k3 = jax.random.split(key, 4)
    x = jax.random.normal(kx, (B, N, F), dtype=jnp.float32)
    w1 = jax.random.normal(k1, (F, E), dtype=jnp.float32) * 0.1
    w2 = jax.random.normal(k2, (F, E), dtype=jnp.float32) * 0.1
    wout = jax.random.normal(k3, (F, H), dtype=jnp.float32) * 0.1

    ref = model_reference(x, w1, w2, wout)

    # f32 MXU-operand path (default, v5e-safe).
    out = jax.block_until_ready(model_forward(x, w1, w2, wout))
    assert out.shape == (B, N, H)
    assert jnp.allclose(out, ref, atol=2e-3, rtol=2e-3), \
        float(jnp.max(jnp.abs(out - ref)))

    # bf16 MXU-operand path (v6e/v7x perf mode): f32 accumulation, looser tolerance.
    out_bf = jax.block_until_ready(
        model_forward(x, w1, w2, wout, compute_dtype=jnp.bfloat16))
    assert out_bf.shape == (B, N, H)
    assert jnp.allclose(out_bf, ref, atol=5e-2, rtol=5e-2), \
        float(jnp.max(jnp.abs(out_bf - ref)))

    print("KERNEL_OK")
</pallas_src>

<mosaic_0001>
module attributes {stable_mosaic.version = 11 : i64} {
  func.func @model_kernel(%arg0: memref<16x32xf32, #tpu.memory_space<vmem>>, %arg1: memref<32x384xf32, #tpu.memory_space<vmem>>, %arg2: memref<2x8x128xf32, #tpu.memory_space<vmem>>) attributes {dimension_semantics = [], scalar_prefetch = 0 : i64, scratch_operands = 0 : i64, tpu.core_type = #tpu.core_type<tc>} {
    %c0 = arith.constant 0 : index
    %c0_0 = arith.constant 0 : index
    %0 = vector.load %arg0[%c0, %c0_0] : memref<16x32xf32, #tpu.memory_space<vmem>>, vector<16x32xf32>
    %c0_1 = arith.constant 0 : index
    %c0_2 = arith.constant 0 : index
    %1 = vector.load %arg1[%c0_1, %c0_2] : memref<32x384xf32, #tpu.memory_space<vmem>>, vector<32x384xf32>
    %cst = arith.constant dense<0.000000e+00> : vector<16x384xf32>
    %2 = tpu.matmul %0, %1, %cst {dimension_numbers = #tpu.dot_dimension_numbers<[1], [0], [0], [1], [0, 0, 1, 1], [], []>} : vector<16x32xf32>, vector<32x384xf32>, vector<16x384xf32> -> vector<16x384xf32>
    %3 = vector.extract_strided_slice %2 {offsets = [0, 0], sizes = [16, 128], strides = [1, 1]} : vector<16x384xf32> to vector<16x128xf32>
    %4 = vector.shape_cast %3 : vector<16x128xf32> to vector<2x8x128xf32>
    %5 = vector.extract_strided_slice %2 {offsets = [0, 128], sizes = [16, 128], strides = [1, 1]} : vector<16x384xf32> to vector<16x128xf32>
    %6 = vector.shape_cast %5 : vector<16x128xf32> to vector<2x8x128xf32>
    %7 = vector.extract_strided_slice %2 {offsets = [0, 256], sizes = [16, 128], strides = [1, 1]} : vector<16x384xf32> to vector<16x128xf32>
    %8 = vector.shape_cast %7 : vector<16x128xf32> to vector<2x8x128xf32>
    "tpu.trace_start"() <{level = 10 : i32, message = "bne,bme->bnm"}> : () -> ()
    %cst_3 = arith.constant dense<0.000000e+00> : vector<2x8x8xf32>
    %9 = tpu.matmul %4, %6, %cst_3 {dimension_numbers = #tpu.dot_dimension_numbers<[2], [2], [1], [1], [0, 0, 0, 1, 1, 1], [0], [0]>} : vector<2x8x128xf32>, vector<2x8x128xf32>, vector<2x8x8xf32> -> vector<2x8x8xf32>
    "tpu.trace_stop"() : () -> ()
    %cst_4 = arith.constant 0.000000e+00 : f32
    %10 = vector.broadcast %cst_4 : f32 to vector<2x8x8xf32>
    %11 = arith.maximumf %9, %10 : vector<2x8x8xf32>
    %cst_5 = arith.constant dense<0xFF800000> : vector<2x8xf32>
    %12 = vector.multi_reduction <maximumf>, %11, %cst_5 [2] : vector<2x8x8xf32> to vector<2x8xf32>
    %13 = vector.shape_cast %12 : vector<2x8xf32> to vector<2x8x1xf32>
    %14 = vector.broadcast %13 : vector<2x8x1xf32> to vector<2x8x8xf32>
    %15 = arith.subf %11, %14 : vector<2x8x8xf32>
    %16 = math.exp %15 : vector<2x8x8xf32>
    %cst_6 = arith.constant dense<0.000000e+00> : vector<2x8xf32>
    %17 = vector.multi_reduction <add>, %16, %cst_6 [2] : vector<2x8x8xf32> to vector<2x8xf32>
    %18 = vector.shape_cast %17 : vector<2x8xf32> to vector<2x8x1xf32>
    %19 = tpu.reciprocal %18 {approx = true} : vector<2x8x1xf32> -> vector<2x8x1xf32>
    %20 = vector.broadcast %19 : vector<2x8x1xf32> to vector<2x8x8xf32>
    %21 = arith.mulf %16, %20 : vector<2x8x8xf32>
    "tpu.trace_start"() <{level = 10 : i32, message = "bnm,bmh->bnh"}> : () -> ()
    %cst_7 = arith.constant dense<0.000000e+00> : vector<2x8x128xf32>
    %22 = tpu.matmul %21, %8, %cst_7 {dimension_numbers = #tpu.dot_dimension_numbers<[2], [1], [1], [2], [0, 0, 0, 1, 1, 2], [0], [0]>} : vector<2x8x8xf32>, vector<2x8x128xf32>, vector<2x8x128xf32> -> vector<2x8x128xf32>
    "tpu.trace_stop"() : () -> ()
    %c0_8 = arith.constant 0 : index
    %c0_9 = arith.constant 0 : index
    %c0_10 = arith.constant 0 : index
    %23 = vector.load %arg2[%c0_8, %c0_9, %c0_10] : memref<2x8x128xf32, #tpu.memory_space<vmem>>, vector<2x8x128xf32>
    tpu.vector_store %arg2[%c0_8, %c0_9, %c0_10], %22 {strides = array<i32>} : memref<2x8x128xf32, #tpu.memory_space<vmem>>, vector<2x8x128xf32>,
    return
  }
}

</mosaic_0001>

<bundles_post_ra>
// kernel: tpu_custom_call.1
= control target key start
LH: loop header
LB: loop body
LE: loop exit
PB: predicated region body
PF: predicated region fallthrough
CT: control target
= control target key end

     0   :  { %7 = vsyncpa [#allocation3], 0  ;;  %s417_s0 = inlined_call_operand.hbm [shape: f32[16,32], index: 0, kind: input, shape index: {}]   ;;  %s418_s1 = inlined_call_operand.hbm [shape: f32[32,384], index: 1, kind: input, shape index: {}]   ;;  %s419_s2 = inlined_call_operand.hbm [shape: f32[2,8,128], index: 2, kind: output, shape index: {}]  }
   0x1   :  { %8 = vsyncpa [#allocation6], 0 }
   0x2   :  { %9 = vsyncpa [#allocation4], 0  ;;  %s14_s11 = sshll.u32 %s417_s0, 4  ;;  %s368_s12 = smov [#allocation2]   ;;  %s15_s11 = int_to_ptr.hbm [resolvable:$true] %s14_s11 }
   0x3   :  { %s16_s13 = sshll.u32 %s368_s12, 4  ;;  %s27_s16 = sshll.u32 %s418_s1, 4  ;;  %s17_s13 = int_to_ptr.vmem [resolvable:$true] %s16_s13  ;;  %s28_s16 = int_to_ptr.hbm [resolvable:$true] %s27_s16 }
   0x4   :  { %s369_s17 = smov 128   ;;  %s370_s18 = smov 8  }
   0x5   :  { %22 = dma.hbm_to_vmem [thread:$0]  %s15_s11, 256, %s17_s13, [#allocation3], %s369_s17, %s369_s17, %s370_s18  }
   0x6   :  { %s371_s19 = smov [#allocation5]   ;;  %s372_s21 = smov 384  }
   0x7   :  { %s29_s20 = sshll.u32 %s371_s19, 4  ;;  %s373_s0 = smov 24   ;;  %s30_s20 = int_to_ptr.vmem [resolvable:$true] %s29_s20 }
   0x8   :  { %35 = dma.hbm_to_vmem [thread:$0]  %s28_s16, 1536, %s30_s20, [#allocation6], %s372_s21, %s372_s21, %s373_s0  }
   0x9   :  { %362 = dma.done.wait [#allocation3], 256  }
   0xa   :  { %363 = vsyncadd [#allocation3], 4294967040 }
   0xb   :  { %364 = dma.done.wait [#allocation6], 1536  }
   0xc   :  { %365 = vsyncadd [#allocation6], 4294965760  ;;  %v56_v0 = vld [vmem:[#allocation5 + $0x50] sm:$0xff]  ;;  %v53_v1 = vld [vmem:[#allocation5 + $0x38] sm:$0xff]  ;;  %vm58_vm0 = vcmask 261120   ;;  %vm176_vm1 = vcmask 64512  }
   0xd   :  { %v55_v2 = vld [vmem:[#allocation5 + $0x48] sm:$0xff]  ;;  %100 = vmatpush.msra.mxu1 %v56_v0  ;;  %v52_v3 = vld [vmem:[#allocation5 + $0x30] sm:$0xff]  ;;  %v50_v4 = vld [vmem:[#allocation5 + $0x20] sm:$0xff]  ;;  %s374_s1 = smov [#allocation7]   ;;  %s253_s25 = sshll.u32 %s419_s2, 4  ;;  %s254_s25 = int_to_ptr.hbm [resolvable:$true] %s253_s25 }
   0xe   :  { %77 = vmatpush.msra.mxu0 %v55_v2  ;;  %v49_v5 = vld [vmem:[#allocation5 + $0x18] sm:$0xff]  ;;  %v47_v6 = vld [vmem:[#allocation5 + $0x8] sm:$0xff]  ;;  %v46_v7 = vld [vmem:[#allocation5] sm:$0xff]  ;;  %s251_s22 = sshll.u32 %s374_s1, 4  ;;  %s252_s22 = int_to_ptr.vmem [resolvable:$true] %s251_s22 }
   0xf   :  { %101 = vmatpush.msra.mxu1 %v53_v1  ;;  %v44_v8 = vld [vmem:[#allocation2] sm:$0xff]  ;;  %v45_v9 = vld [vmem:[#allocation2 + $0x8] sm:$0xff]  ;;  %v54_v15 = vld [vmem:[#allocation5 + $0x40] sm:$0xff] }
  0x10   :  { %78 = vmatpush.msra.mxu0 %v52_v3  ;;  %v57_v14 = vld [vmem:[#allocation5 + $0x58] sm:$0xff]  ;;  %v51_v16 = vld [vmem:[#allocation5 + $0x28] sm:$0xff]  ;;  %v48_v17 = vld [vmem:[#allocation5 + $0x10] sm:$0xff] }
  0x11   :  { %102 = vmatpush.msra.mxu1 %v50_v4  ;;  %123 = vmatpush.msra.mxu2 %v57_v14 }
  0x12   :  { %79 = vmatpush.msra.mxu0 %v49_v5 }
  0x13   :  { %103 = vmatpush.msra.mxu1 %v47_v6  ;;  %124 = vmatpush.msra.mxu2 %v54_v15 }
  0x14   :  { %80 = vmatpush.msra.mxu0 %v46_v7  ;;  %269 = vmatmul.msk.f32.vlgmr.msra.gmra.mxu1 %vm58_vm0, %v44_v8 }
  0x15   :  { %267 = vmatmul.msk.f32.vlgmr.msra.gmra.mxu0 %vm58_vm0, %v44_v8  ;;  %125 = vmatpush.msra.mxu2 %v51_v16 }
  0x17   :  { %126 = vmatpush.msra.mxu2 %v48_v17 }
  0x18   :  { %271 = vmatmul.msk.f32.vlgmr.msra.gmra.mxu2 %vm58_vm0, %v44_v8 }
  0x1c   :  { %270 = vmatmul.msk.f32.gmra.mxu1 %vm58_vm0, %v45_v9 }
  0x1d   :  { %268 = vmatmul.msk.f32.gmra.mxu0 %vm58_vm0, %v45_v9 }
  0x20   :  { %272 = vmatmul.msk.f32.gmra.mxu2 %vm58_vm0, %v45_v9 }
  0x91   :  { %v105_v10 = vpop.f32.mrf.mxu1 }
  0x92   :  { %v82_v11 = vpop.f32.mrf.mxu0  ;;  %149 = vmatpush.xpose.msra.mxu3 %v105_v10 }
  0x95   :  { %150 = vmatmul.f32.vlgmr.msra.gmra.mxu3 %v82_v11 }
  0x99   :  { %v108_v12 = vpop.f32.mrf.mxu1 }
  0x9a   :  { %169 = vmatpush.xpose.msrb.mxu3 %v108_v12  ;;  %v85_v13 = vpop.f32.mrf.mxu0 }
  0x9b   :  { %v128_v25 = vpop.f32.mrf.mxu2 }
  0x9d   :  { %170 = vmatmul.f32.vlgmr.msrb.gmra.mxu3 %v85_v13 }
  0x9e   :  { %217 = vmatpush.msra.mxu3 %v128_v25 }
  0xa3   :  { %v131_v35 = vpop.f32.mrf.mxu2 }
  0xa4   :  { %240 = vmatpush.msrb.mxu0 %v131_v35 }
 0x118   :  { %v151_v18 = vpop.f32.mrf.mxu3 }
 0x119   :  { %v174_v19 = vmax.f32 %v151_v18, 0.0 }
 0x11b   :  { %v177_v20 = vsel %vm176_vm1, %v174_v19, -inf }
 0x11c   :  { %178 = vmax.xlane.f32.xlu0 %v177_v20 }
 0x120   :  { %v171_v21 = vpop.f32.mrf.mxu3 }
 0x121   :  { %v175_v22 = vmax.f32 %v171_v21, 0.0 }
 0x123   :  { %v180_v23 = vsel %vm176_vm1, %v175_v22, -inf }
 0x124   :  { %181 = vmax.xlane.f32.xlu0 %v180_v23 }
 0x18f   :  { %v179_v24 = vpop.xlane.xlu0 %178 }
 0x190   :  { %v183_v26 = vsub.f32 %v174_v19, %v179_v24 }
 0x192   :  { %v185_v27 = vmul.f32 1.442695, %v183_v26 }
 0x194   :  { %282 = vpow2.f32 %v185_v27 }
 0x197   :  { %v182_v28 = vpop.xlane.xlu0 %181 }
 0x198   :  { %v184_v29 = vsub.f32 %v175_v22, %v182_v28 }
 0x19a   :  { %v283_v30 = vpop.eup %282  ;;  %v187_v31 = vmul.f32 1.442695, %v184_v29 }
 0x19b   :  { %v189_v32 = vsel %vm176_vm1, %v283_v30, 0.0 }
 0x19c   :  { %284 = vpow2.f32 %v187_v31  ;;  %190 = vadd.xlane.f32.xlu1 %v189_v32 }
 0x1a2   :  { %v285_v33 = vpop.eup %284 }
 0x1a3   :  { %v192_v34 = vsel %vm176_vm1, %v285_v33, 0.0 }
 0x1a4   :  { %193 = vadd.xlane.f32.xlu1 %v192_v34 }
 0x20f   :  { %v191_v36 = vpop.xlane.xlu1 %190 }
 0x210   :  { %286 = vrcp.f32 %v191_v36 }
 0x216   :  { %v287_v37 = vpop.eup %286 }
 0x217   :  { %v197_v38 = vmul.f32 %v287_v37, %v283_v30  ;;  %v194_v39 = vpop.xlane.xlu1 %193 }
 0x218   :  { %288 = vrcp.f32 %v194_v39 }
 0x219   :  { %273 = vmatmul.msk.f32.vlgmr.msra.gmra.mxu3 %vm176_vm1, %v197_v38 }
 0x21e   :  { %v289_v40 = vpop.eup %288 }
 0x21f   :  { %v198_v41 = vmul.f32 %v289_v40, %v285_v33 }
 0x221   :  { %274 = vmatmul.msk.f32.vlgmr.msrb.gmra.mxu0 %vm176_vm1, %v198_v41 }
 0x29c   :  { %v219_v42 = vpop.f32.mrf.mxu3 }
 0x29d   :  { %245 = vst [vmem:[#allocation7] sm:$0xff] %v219_v42 }
 0x29e   :  { %v242_v43 = vpop.f32.mrf.mxu0 }
 0x29f   :  { %246 = vst [vmem:[#allocation7 + $0x8] sm:$0xff] %v242_v43 }
 0x2a0   :  { %259 = dma.vmem_to_hbm [thread:$0]  %s252_s22, 256, %s254_s25, [#allocation4], %s369_s17, %s369_s17, %s370_s18  }
 0x2a1   :  { %366 = dma.done.wait [#allocation4], 256  }
 0x2a2   :  { %367 = vsyncadd [#allocation4], 4294967040 }
 0x2a3   :  { %264 = vsyncpa [#allocation3], 1 }
 0x2a4   :  { %265 = vsyncpa [#allocation6], 1 }
 0x2a5   :  { %266 = vsyncpa [#allocation4], 1 }

</bundles_post_ra>
